<compile_context>
chip_gen: v7x
topology: tpu7x:2x2x1
jax: 0.10.0
libtpu: 0.0.40
codegen_flags: <defaults>
</compile_context>

<pallas_src>
import functools

import jax
import jax.numpy as jnp
from jax.experimental import pallas as pl
from jax.experimental.pallas import tpu as pltpu


def _round_up(x, m):
    return ((x + m - 1) // m) * m


def _vmem_capacity_bytes():
    """Physical VMEM of the local TPU, with a conservative fallback."""
    try:
        info = pltpu.get_tpu_info()
        cap = getattr(info, "vmem_capacity_bytes", None)
        if cap:
            return int(cap)
    except Exception:
        pass
    return 64 * 1024 * 1024  # conservative: v7x per-TensorCore VMEM


def _pack_columns(cols, shape):
    """Pack a list of (R, 1) columns into an (R, W) f32 tile via iota-select."""
    lane = jax.lax.broadcasted_iota(jnp.int32, shape, 1)
    out = jnp.zeros(shape, jnp.float32)
    for idx, c in enumerate(cols):
        out = jnp.where(lane == idx, jnp.broadcast_to(c, shape), out)
    return out


def _idro_kernel(alpha, eps, ema, rho, n_groups, d_total, d_block, use_roll,
                 lo_ref, gid_ref, hfun_ref, grads_ref, out_ref, acc_ref):
    """Grid axis 0 streams D-chunks of the (unpadded) per-group gradients."""
    k = pl.program_id(0)
    nb = n_groups // 2 + 1

    @pl.when(k == 0)
    def _init():
        acc_ref[...] = jnp.zeros_like(acc_ref)

    # ---- streamed accumulation over D (DMA double-buffered) -----------------
    a = grads_ref[...]                                        # (G, td)
    if d_total % d_block != 0:
        # Last chunk extends past D: Pallas does not zero the padded tail.
        lane = jax.lax.broadcasted_iota(jnp.int32, a.shape, 1)
        a = jnp.where(lane + k * d_block < d_total, a, jnp.zeros_like(a))

    if use_roll:
        # Transpose-free Gram: accumulate wrapped diagonal "bands"
        #   band[i, s] = sum_d A[i, d] * A[(i - s) mod G, d] = gram[i, (i-s)%G]
        # only for s = 0 .. G//2 (symmetry gives the rest).  VPU mul + lane
        # reduce + XLU sublane roll; no MXU weight latching / transposes.
        a32 = a.astype(jnp.float32)
        bands = []
        for s in range(nb):
            rolled = a32 if s == 0 else pltpu.roll(a32, s, axis=0)
            bands.append(jnp.sum(a32 * rolled, axis=1, keepdims=True))  # (G, 1)
        acc_ref[...] += _pack_columns(bands, (n_groups, nb))
    else:
        # Larger G: the MXU shape is well formed; accumulate the raw Gram.
        acc_ref[...] += jax.lax.dot_general(
            a, a, (((1,), (1,)), ((), ())),
            preferred_element_type=jnp.float32)

    # ---- one-shot epilogue on the last D-chunk (exact math, off hot path) ---
    @pl.when(k == pl.num_programs(0) - 1)
    def _finalize():
        ng = n_groups
        lo = lo_ref[...]                                      # (B, 2): [losses, ones]
        gid = gid_ref[...]                                    # (1, B) int32
        h_fun = hfun_ref[...]                                 # (G, 1)
        batch = lo.shape[0]

        # scatter_add of losses AND counts in one (G,B)x(B,2) matmul.
        sub = jax.lax.broadcasted_iota(jnp.int32, (ng, batch), 0)
        onehot = (sub == gid).astype(jnp.float32)             # (G, B)
        agg = jnp.dot(onehot, lo, preferred_element_type=jnp.float32)  # (G, 2)
        gdro_sum = agg[:, 0:1]
        counts = agg[:, 1:2]

        zero_ct = (counts == 0).astype(jnp.float32)
        gdro_losses = gdro_sum / (counts + zero_ct)           # exact divide
        robust = jnp.sum(gdro_losses * h_fun, keepdims=True)  # (1, 1)

        if use_roll:
            band = acc_ref[...]                               # (G, nb)
            diag = band[:, 0:1]                               # gram diagonal
        else:
            gram = acc_ref[...]                               # (G, G)
            ii = jax.lax.broadcasted_iota(jnp.int32, (ng, ng), 0)
            jj = jax.lax.broadcasted_iota(jnp.int32, (ng, ng), 1)
            diag = jnp.sum(jnp.where(ii == jj, gram, 0.0), axis=1, keepdims=True)

        # Cosine normalisation from the Gram diagonal; exact divides (one-shot).
        inv_norm = 1.0 / (jnp.sqrt(diag) + 1e-12)             # (G, 1)
        # NOTE: jnp.power(gl, alpha) is NaN for negative group means with
        # fractional alpha -- identical to the PyTorch reference.
        glp = jnp.power(gdro_losses, alpha)                   # (G, 1)
        w = glp * inv_norm                                    # (G, 1)

        # t = gram @ w, never materialising the Gram in the roll path:
        #   gram[i, (i-s)%G] = band[i, s]                      (s <= G//2)
        #   gram[i, (i-s)%G] = roll(band[:, G-s], s)[i]        (s >  G//2, symmetry)
        if use_roll:
            t = band[:, 0:1] * w
            for s in range(1, ng):
                if s <= ng // 2:
                    band_s = band[:, s:s + 1]
                else:
                    band_s = pltpu.roll(band[:, ng - s:ng - s + 1], s, axis=0)
                t = t + band_s * pltpu.roll(w, s, axis=0)
        else:
            t = jnp.dot(gram, w, preferred_element_type=jnp.float32)

        # rho * mean_i(RTG)_j = (rho/G) * w_j * (gram @ w)_j
        mask = (counts > 0).astype(jnp.float32)
        exp_arg = (rho / ng) * w * t * mask
        exp_arg = exp_arg - jnp.max(exp_arg, keepdims=True)
        weight = jnp.exp(exp_arg)

        h_new = jnp.power(h_fun, ema) * weight * (counts != 0).astype(jnp.float32)
        h_new = h_new / jnp.sum(h_new, keepdims=True)         # exact divide
        h_new = jnp.maximum(h_new, eps)

        # Pack the four tiny results into one (G, 8) slab (single output DMA).
        out_ref[...] = _pack_columns([robust, gdro_losses, counts, h_new], (ng, 8))


def idro_forward(losses, g, all_grads, h_fun, *, alpha, eps, ema, rho,
                 block_d=None):
    """Pallas implementation of iDROLoss.forward (training path).

    losses    : (B,)   f32        per-example losses
    g         : (B,)   i32        group ids in [0, G)
    all_grads : (G, D) f32/bf16   per-group flattened gradients (pass bf16 to
                                  halve HBM traffic; bands still accumulate f32)
    h_fun     : (G,)   f32        current h_fun buffer
    Returns (robust_loss, gdro_losses_agg, gdro_counts_agg, new_h_fun).
    """
    B = int(losses.shape[0])
    G, D = int(all_grads.shape[0]), int(all_grads.shape[1])
    if int(h_fun.shape[0]) != G:
        raise ValueError("h_fun must have n_groups entries")

    itemsize = jnp.dtype(all_grads.dtype).itemsize
    vmem_cap = _vmem_capacity_bytes()
    small_vmem = vmem_cap <= 64 * 1024 * 1024           # v7x: 64 MiB / TensorCore
    stream_budget = (20 if small_vmem else 48) * 1024 * 1024
    vmem_limit_cap = (48 if small_vmem else 100) * 1024 * 1024

    # Physical sublane footprint of a (G, td) block (f32 rounds rows to 8,
    # bf16 to 16).  The grads stream is the only large VMEM consumer.
    rows_phys = _round_up(G, max(8, 32 // itemsize))
    d_aligned = _round_up(D, 128)
    max_td = max(128, ((stream_budget // (2 * rows_phys * itemsize)) // 128) * 128)
    if block_d is None:
        td = d_aligned
    else:
        td = _round_up(max(128, min(int(block_d), d_aligned)), 128)
    td = min(td, max_td)
    num_k = -(-D // td)

    # Small G: transpose-free VPU/XLU band accumulation; otherwise MXU Gram.
    use_roll = (G % 8 == 0) and (G <= 16)
    nb = G // 2 + 1
    acc_shape = (G, nb) if use_roll else (G, G)

    block_bytes = rows_phys * td * itemsize
    n_buf = 3 if (num_k >= 8 and 3 * block_bytes <= (stream_budget * 3) // 2) else 2

    acc_bytes = rows_phys * _round_up(acc_shape[1], 128) * 4
    small_bytes = 4 * (8 * B + 8 * _round_up(B, 128) + 2 * rows_phys * 128)
    need = n_buf * block_bytes + acc_bytes + small_bytes
    vmem_limit = int(min(vmem_limit_cap,
                         max(32 * 1024 * 1024, need + 8 * 1024 * 1024)))

    # Tiny side inputs (column/row oriented so the epilogue needs no transposes).
    lo_col = jnp.stack([losses.astype(jnp.float32),
                        jnp.ones((B,), jnp.float32)], axis=1)      # (B, 2)
    gid_row = g.astype(jnp.int32).reshape(1, B)                    # (1, B)
    hfun_col = h_fun.astype(jnp.float32).reshape(G, 1)             # (G, 1)

    if n_buf == 3:
        grads_spec = pl.BlockSpec((G, td), lambda k: (0, k),
                                  pipeline_mode=pl.Buffered(3))
    else:
        grads_spec = pl.BlockSpec((G, td), lambda k: (0, k))

    kernel = functools.partial(_idro_kernel, float(alpha), float(eps),
                               float(ema), float(rho), G, D, td, use_roll)

    out = pl.pallas_call(
        kernel,
        out_shape=jax.ShapeDtypeStruct((G, 8), jnp.float32),
        grid=(num_k,),
        in_specs=[
            pl.BlockSpec((B, 2), lambda k: (0, 0)),
            pl.BlockSpec((1, B), lambda k: (0, 0)),
            pl.BlockSpec((G, 1), lambda k: (0, 0)),
            grads_spec,
        ],
        out_specs=pl.BlockSpec((G, 8), lambda k: (0, 0)),
        scratch_shapes=[pltpu.VMEM(acc_shape, jnp.float32)],
        compiler_params=pltpu.CompilerParams(
            dimension_semantics=("arbitrary",),
            vmem_limit_bytes=vmem_limit),
    )(lo_col, gid_row, hfun_col, all_grads)

    robust = out[0, 0]
    gdro_losses = out[:, 1]
    counts = out[:, 2]
    h_new = out[:, 3]
    return robust, gdro_losses, counts, h_new


def idro_reference(losses, g, all_grads, h_fun, *, alpha, eps, ema, rho):
    """Pure-JAX reference mirroring the PyTorch forward semantics."""
    G = h_fun.shape[0]
    onehot = jax.nn.one_hot(g, G, dtype=jnp.float32)
    gdro_sum = onehot.T @ losses
    counts = onehot.sum(0)
    gl = gdro_sum / (counts + (counts == 0).astype(jnp.float32))
    robust = jnp.sum(gl * h_fun)
    gn = all_grads / (1e-12 + jnp.linalg.norm(all_grads, axis=-1, keepdims=True))
    rtg = gn @ gn.T
    glp = gl ** alpha
    rtg = glp[:, None] * glp[None, :] * rtg
    mask = (counts > 0).astype(jnp.float32)
    e = rho * rtg.mean(0) * mask
    e = e - e.max()
    w = jnp.exp(e)
    hn = h_fun ** ema * w * (counts != 0).astype(jnp.float32)
    hn = hn / hn.sum()
    hn = jnp.maximum(hn, eps)
    return robust, gl, counts, hn


if __name__ == "__main__":
    # Small deterministic setup: batch=16, n_groups=8, flattened grad dim=1152.
    # block_d=512 forces a 3-step D grid whose last chunk is ragged, exercising
    # init / accumulate / tail-mask / finalize; the second call uses the
    # auto-derived single-chunk tile.
    B, G, D = 16, 8, 1152
    alpha, eps, ema, rho = 0.5, 0.01, 0.1, 1.0

    key = jax.random.PRNGKey(0)
    k1, k2, k3 = jax.random.split(key, 3)
    losses = jax.random.uniform(k1, (B,), jnp.float32, minval=0.1, maxval=2.0)
    g = jax.random.randint(k2, (B,), 0, G, dtype=jnp.int32)
    all_grads = jax.random.normal(k3, (G, D), jnp.float32)
    h_fun = jnp.ones((G,), jnp.float32)      # buffer init from DROGreedyLoss

    r_ref, gl_ref, c_ref, h_ref = idro_reference(
        losses, g, all_grads, h_fun, alpha=alpha, eps=eps, ema=ema, rho=rho)

    tol = dict(rtol=1e-3, atol=1e-3)
    for bd in (512, None):
        robust, gl, counts, h_new = idro_forward(
            losses, g, all_grads, h_fun,
            alpha=alpha, eps=eps, ema=ema, rho=rho, block_d=bd)
        jax.block_until_ready((robust, gl, counts, h_new))
        assert jnp.allclose(robust, r_ref, **tol)
        assert jnp.allclose(gl, gl_ref, **tol)
        assert jnp.allclose(counts, c_ref, **tol)
        assert jnp.allclose(h_new, h_ref, **tol)

    print("KERNEL_OK")
</pallas_src>

<mosaic_0001>
module attributes {stable_mosaic.version = 11 : i64} {
  func.func @_idro_kernel(%arg0: i32, %arg1: memref<16x2xf32, #tpu.memory_space<vmem>>, %arg2: memref<1x16xi32, #tpu.memory_space<vmem>>, %arg3: memref<8x1xf32, #tpu.memory_space<vmem>>, %arg4: memref<8x512xf32, #tpu.memory_space<vmem>>, %arg5: memref<8x8xf32, #tpu.memory_space<vmem>>, %arg6: memref<8x5xf32, #tpu.memory_space<vmem>>) attributes {dimension_semantics = [#tpu.dimension_semantics<arbitrary>], iteration_bounds = array<i64: 3>, scalar_prefetch = 0 : i64, scratch_operands = 1 : i64, tpu.core_type = #tpu.core_type<tc>, window_params = [{pipeline_mode = #tpu.pipeline_mode<synchronous>, transform_indices = @transform_0, window_bounds = array<i64: 16, 2>}, {pipeline_mode = #tpu.pipeline_mode<synchronous>, transform_indices = @transform_1, window_bounds = array<i64: 1, 16>}, {pipeline_mode = #tpu.pipeline_mode<synchronous>, transform_indices = @transform_2, window_bounds = array<i64: 8, 1>}, {transform_indices = @transform_3, window_bounds = array<i64: 8, 512>}, {pipeline_mode = #tpu.pipeline_mode<synchronous>, transform_indices = @transform_4, window_bounds = array<i64: 8, 8>}]} {
    %c0_i32 = arith.constant 0 : i32
    %0 = arith.cmpi eq, %arg0, %c0_i32 : i32
    %1 = arith.extui %0 : i1 to i32
    %c0_i32_0 = arith.constant 0 : i32
    %2 = arith.cmpi ne, %1, %c0_i32_0 : i32
    scf.if %2 {
      %cst_19 = arith.constant 0.000000e+00 : f32
      %64 = vector.broadcast %cst_19 : f32 to vector<8x5xf32>
      %c0_20 = arith.constant 0 : index
      %c0_21 = arith.constant 0 : index
      %65 = vector.load %arg6[%c0_20, %c0_21] : memref<8x5xf32, #tpu.memory_space<vmem>>, vector<8x5xf32>
      tpu.vector_store %arg6[%c0_20, %c0_21], %64 {strides = array<i32>} : memref<8x5xf32, #tpu.memory_space<vmem>>, vector<8x5xf32>,
    } else {
    }
    %c0 = arith.constant 0 : index
    %c0_1 = arith.constant 0 : index
    %3 = vector.load %arg4[%c0, %c0_1] : memref<8x512xf32, #tpu.memory_space<vmem>>, vector<8x512xf32>
    %4 = tpu.iota {dimensions = array<i32: 1>} : vector<8x512xi32>
    %c512_i32 = arith.constant 512 : i32
    %5 = arith.muli %arg0, %c512_i32 : i32
    %6 = vector.broadcast %5 : i32 to vector<8x512xi32>
    %7 = arith.addi %4, %6 : vector<8x512xi32>
    %c1152_i32 = arith.constant 1152 : i32
    %8 = vector.broadcast %c1152_i32 : i32 to vector<8x512xi32>
    %9 = arith.cmpi slt, %7, %8 : vector<8x512xi32>
    %cst = arith.constant 0.000000e+00 : f32
    %10 = vector.broadcast %cst : f32 to vector<8x512xf32>
    %11 = arith.select %9, %3, %10 : vector<8x512xi1>, vector<8x512xf32>
    %12 = arith.mulf %11, %11 : vector<8x512xf32>
    %cst_2 = arith.constant dense<0.000000e+00> : vector<8xf32>
    %13 = vector.multi_reduction <add>, %12, %cst_2 [1] : vector<8x512xf32> to vector<8xf32>
    %14 = vector.shape_cast %13 : vector<8xf32> to vector<8x1xf32>
    %c1_i32 = arith.constant 1 : i32
    %15 = tpu.dynamic_rotate %11 by %c1_i32 dim 0 : vector<8x512xf32>, i32 -> vector<8x512xf32>
    %16 = arith.mulf %11, %15 : vector<8x512xf32>
    %cst_3 = arith.constant dense<0.000000e+00> : vector<8xf32>
    %17 = vector.multi_reduction <add>, %16, %cst_3 [1] : vector<8x512xf32> to vector<8xf32>
    %18 = vector.shape_cast %17 : vector<8xf32> to vector<8x1xf32>
    %c2_i32 = arith.constant 2 : i32
    %19 = tpu.dynamic_rotate %11 by %c2_i32 dim 0 : vector<8x512xf32>, i32 -> vector<8x512xf32>
    %20 = arith.mulf %11, %19 : vector<8x512xf32>
    %cst_4 = arith.constant dense<0.000000e+00> : vector<8xf32>
    %21 = vector.multi_reduction <add>, %20, %cst_4 [1] : vector<8x512xf32> to vector<8xf32>
    %22 = vector.shape_cast %21 : vector<8xf32> to vector<8x1xf32>
    %c3_i32 = arith.constant 3 : i32
    %23 = tpu.dynamic_rotate %11 by %c3_i32 dim 0 : vector<8x512xf32>, i32 -> vector<8x512xf32>
    %24 = arith.mulf %11, %23 : vector<8x512xf32>
    %cst_5 = arith.constant dense<0.000000e+00> : vector<8xf32>
    %25 = vector.multi_reduction <add>, %24, %cst_5 [1] : vector<8x512xf32> to vector<8xf32>
    %26 = vector.shape_cast %25 : vector<8xf32> to vector<8x1xf32>
    %c4_i32 = arith.constant 4 : i32
    %27 = tpu.dynamic_rotate %11 by %c4_i32 dim 0 : vector<8x512xf32>, i32 -> vector<8x512xf32>
    %28 = arith.mulf %11, %27 : vector<8x512xf32>
    %cst_6 = arith.constant dense<0.000000e+00> : vector<8xf32>
    %29 = vector.multi_reduction <add>, %28, %cst_6 [1] : vector<8x512xf32> to vector<8xf32>
    %30 = vector.shape_cast %29 : vector<8xf32> to vector<8x1xf32>
    %c0_7 = arith.constant 0 : index
    %c0_8 = arith.constant 0 : index
    %31 = vector.load %arg6[%c0_7, %c0_8] : memref<8x5xf32, #tpu.memory_space<vmem>>, vector<8x5xf32>
    %32 = tpu.iota {dimensions = array<i32: 1>} : vector<8x5xi32>
    %cst_9 = arith.constant 0.000000e+00 : f32
    %33 = vector.broadcast %cst_9 : f32 to vector<8x5xf32>
    %c0_i32_10 = arith.constant 0 : i32
    %34 = vector.broadcast %c0_i32_10 : i32 to vector<8x5xi32>
    %35 = arith.cmpi eq, %32, %34 : vector<8x5xi32>
    %36 = vector.shape_cast %14 : vector<8x1xf32> to vector<8x1xf32>
    %37 = vector.broadcast %36 : vector<8x1xf32> to vector<8x5xf32>
    %38 = arith.select %35, %37, %33 : vector<8x5xi1>, vector<8x5xf32>
    %c1_i32_11 = arith.constant 1 : i32
    %39 = vector.broadcast %c1_i32_11 : i32 to vector<8x5xi32>
    %40 = arith.cmpi eq, %32, %39 : vector<8x5xi32>
    %41 = vector.shape_cast %18 : vector<8x1xf32> to vector<8x1xf32>
    %42 = vector.broadcast %41 : vector<8x1xf32> to vector<8x5xf32>
    %43 = arith.select %40, %42, %38 : vector<8x5xi1>, vector<8x5xf32>
    %c2_i32_12 = arith.constant 2 : i32
    %44 = vector.broadcast %c2_i32_12 : i32 to vector<8x5xi32>
    %45 = arith.cmpi eq, %32, %44 : vector<8x5xi32>
    %46 = vector.shape_cast %22 : vector<8x1xf32> to vector<8x1xf32>
    %47 = vector.broadcast %46 : vector<8x1xf32> to vector<8x5xf32>
    %48 = arith.select %45, %47, %43 : vector<8x5xi1>, vector<8x5xf32>
    %c3_i32_13 = arith.constant 3 : i32
    %49 = vector.broadcast %c3_i32_13 : i32 to vector<8x5xi32>
    %50 = arith.cmpi eq, %32, %49 : vector<8x5xi32>
    %51 = vector.shape_cast %26 : vector<8x1xf32> to vector<8x1xf32>
    %52 = vector.broadcast %51 : vector<8x1xf32> to vector<8x5xf32>
    %53 = arith.select %50, %52, %48 : vector<8x5xi1>, vector<8x5xf32>
    %c4_i32_14 = arith.constant 4 : i32
    %54 = vector.broadcast %c4_i32_14 : i32 to vector<8x5xi32>
    %55 = arith.cmpi eq, %32, %54 : vector<8x5xi32>
    %56 = vector.shape_cast %30 : vector<8x1xf32> to vector<8x1xf32>
    %57 = vector.broadcast %56 : vector<8x1xf32> to vector<8x5xf32>
    %58 = arith.select %55, %57, %53 : vector<8x5xi1>, vector<8x5xf32>
    %59 = arith.addf %31, %58 : vector<8x5xf32>
    %c0_15 = arith.constant 0 : index
    %c0_16 = arith.constant 0 : index
    %60 = vector.load %arg6[%c0_15, %c0_16] : memref<8x5xf32, #tpu.memory_space<vmem>>, vector<8x5xf32>
    tpu.vector_store %arg6[%c0_15, %c0_16], %59 {strides = array<i32>} : memref<8x5xf32, #tpu.memory_space<vmem>>, vector<8x5xf32>,
    %c2_i32_17 = arith.constant 2 : i32
    %61 = arith.cmpi eq, %arg0, %c2_i32_17 : i32
    %62 = arith.extui %61 : i1 to i32
    %c0_i32_18 = arith.constant 0 : i32
    %63 = arith.cmpi ne, %62, %c0_i32_18 : i32
    scf.if %63 {
      %c0_19 = arith.constant 0 : index
      %c0_20 = arith.constant 0 : index
      %64 = vector.load %arg1[%c0_19, %c0_20] : memref<16x2xf32, #tpu.memory_space<vmem>>, vector<16x2xf32>
      %c0_21 = arith.constant 0 : index
      %c0_22 = arith.constant 0 : index
      %65 = vector.load %arg2[%c0_21, %c0_22] : memref<1x16xi32, #tpu.memory_space<vmem>>, vector<1x16xi32>
      %c0_23 = arith.constant 0 : index
      %c0_24 = arith.constant 0 : index
      %66 = vector.load %arg3[%c0_23, %c0_24] : memref<8x1xf32, #tpu.memory_space<vmem>>, vector<8x1xf32>
      %67 = tpu.iota {dimensions = array<i32: 0>} : vector<8x16xi32>
      %68 = vector.broadcast %65 : vector<1x16xi32> to vector<8x16xi32>
      %69 = arith.cmpi eq, %67, %68 : vector<8x16xi32>
      %70 = arith.extui %69 : vector<8x16xi1> to vector<8x16xi32>
      %71 = arith.sitofp %70 : vector<8x16xi32> to vector<8x16xf32>
      %cst_25 = arith.constant dense<0.000000e+00> : vector<8x2xf32>
      %72 = tpu.matmul %71, %64, %cst_25 {dimension_numbers = #tpu.dot_dimension_numbers<[1], [0], [0], [1], [0, 0, 1, 1], [], []>} : vector<8x16xf32>, vector<16x2xf32>, vector<8x2xf32> -> vector<8x2xf32>
      %73 = vector.extract_strided_slice %72 {offsets = [0, 0], sizes = [8, 1], strides = [1, 1]} : vector<8x2xf32> to vector<8x1xf32>
      %74 = vector.extract_strided_slice %72 {offsets = [0, 1], sizes = [8, 1], strides = [1, 1]} : vector<8x2xf32> to vector<8x1xf32>
      %cst_26 = arith.constant 0.000000e+00 : f32
      %75 = vector.broadcast %cst_26 : f32 to vector<8x1xf32>
      %76 = arith.cmpf oeq, %74, %75 : vector<8x1xf32>
      %77 = arith.extui %76 : vector<8x1xi1> to vector<8x1xi32>
      %78 = arith.sitofp %77 : vector<8x1xi32> to vector<8x1xf32>
      %79 = arith.addf %74, %78 : vector<8x1xf32>
      %80 = arith.divf %73, %79 : vector<8x1xf32>
      %81 = arith.mulf %80, %66 : vector<8x1xf32>
      %82 = vector.shape_cast %81 : vector<8x1xf32> to vector<1x8x1xf32>
      %cst_27 = arith.constant dense<0.000000e+00> : vector<1xf32>
      %83 = vector.multi_reduction <add>, %82, %cst_27 [1, 2] : vector<1x8x1xf32> to vector<1xf32>
      %84 = vector.shape_cast %83 : vector<1xf32> to vector<1x1x1xf32>
      %85 = vector.extract %84[0, 0, 0] : f32 from vector<1x1x1xf32>
      %86 = vector.broadcast %85 : f32 to vector<1x1xf32>
      %c0_28 = arith.constant 0 : index
      %c0_29 = arith.constant 0 : index
      %87 = vector.load %arg6[%c0_28, %c0_29] : memref<8x5xf32, #tpu.memory_space<vmem>>, vector<8x5xf32>
      %88 = vector.extract_strided_slice %87 {offsets = [0, 0], sizes = [8, 1], strides = [1, 1]} : vector<8x5xf32> to vector<8x1xf32>
      %89 = math.sqrt %88 : vector<8x1xf32>
      %cst_30 = arith.constant 9.99999996E-13 : f32
      %90 = vector.broadcast %cst_30 : f32 to vector<8x1xf32>
      %91 = arith.addf %89, %90 : vector<8x1xf32>
      %cst_31 = arith.constant 1.000000e+00 : f32
      %92 = vector.broadcast %cst_31 : f32 to vector<8x1xf32>
      %93 = arith.divf %92, %91 : vector<8x1xf32>
      %cst_32 = arith.constant 5.000000e-01 : f32
      %94 = vector.broadcast %cst_32 : f32 to vector<8x1xf32>
      %95 = math.powf %80, %94 : vector<8x1xf32>
      %96 = arith.mulf %95, %93 : vector<8x1xf32>
      %97 = vector.extract_strided_slice %87 {offsets = [0, 0], sizes = [8, 1], strides = [1, 1]} : vector<8x5xf32> to vector<8x1xf32>
      %98 = arith.mulf %97, %96 : vector<8x1xf32>
      %99 = vector.extract_strided_slice %87 {offsets = [0, 1], sizes = [8, 1], strides = [1, 1]} : vector<8x5xf32> to vector<8x1xf32>
      %c1_i32_33 = arith.constant 1 : i32
      %100 = tpu.dynamic_rotate %96 by %c1_i32_33 dim 0 : vector<8x1xf32>, i32 -> vector<8x1xf32>
      %101 = arith.mulf %99, %100 : vector<8x1xf32>
      %102 = arith.addf %98, %101 : vector<8x1xf32>
      %103 = vector.extract_strided_slice %87 {offsets = [0, 2], sizes = [8, 1], strides = [1, 1]} : vector<8x5xf32> to vector<8x1xf32>
      %c2_i32_34 = arith.constant 2 : i32
      %104 = tpu.dynamic_rotate %96 by %c2_i32_34 dim 0 : vector<8x1xf32>, i32 -> vector<8x1xf32>
      %105 = arith.mulf %103, %104 : vector<8x1xf32>
      %106 = arith.addf %102, %105 : vector<8x1xf32>
      %107 = vector.extract_strided_slice %87 {offsets = [0, 3], sizes = [8, 1], strides = [1, 1]} : vector<8x5xf32> to vector<8x1xf32>
      %c3_i32_35 = arith.constant 3 : i32
      %108 = tpu.dynamic_rotate %96 by %c3_i32_35 dim 0 : vector<8x1xf32>, i32 -> vector<8x1xf32>
      %109 = arith.mulf %107, %108 : vector<8x1xf32>
      %110 = arith.addf %106, %109 : vector<8x1xf32>
      %111 = vector.extract_strided_slice %87 {offsets = [0, 4], sizes = [8, 1], strides = [1, 1]} : vector<8x5xf32> to vector<8x1xf32>
      %c4_i32_36 = arith.constant 4 : i32
      %112 = tpu.dynamic_rotate %96 by %c4_i32_36 dim 0 : vector<8x1xf32>, i32 -> vector<8x1xf32>
      %113 = arith.mulf %111, %112 : vector<8x1xf32>
      %114 = arith.addf %110, %113 : vector<8x1xf32>
      %115 = vector.extract_strided_slice %87 {offsets = [0, 3], sizes = [8, 1], strides = [1, 1]} : vector<8x5xf32> to vector<8x1xf32>
      %c5_i32 = arith.constant 5 : i32
      %116 = tpu.dynamic_rotate %115 by %c5_i32 dim 0 : vector<8x1xf32>, i32 -> vector<8x1xf32>
      %c5_i32_37 = arith.constant 5 : i32
      %117 = tpu.dynamic_rotate %96 by %c5_i32_37 dim 0 : vector<8x1xf32>, i32 -> vector<8x1xf32>
      %118 = arith.mulf %116, %117 : vector<8x1xf32>
      %119 = arith.addf %114, %118 : vector<8x1xf32>
      %120 = vector.extract_strided_slice %87 {offsets = [0, 2], sizes = [8, 1], strides = [1, 1]} : vector<8x5xf32> to vector<8x1xf32>
      %c6_i32 = arith.constant 6 : i32
      %121 = tpu.dynamic_rotate %120 by %c6_i32 dim 0 : vector<8x1xf32>, i32 -> vector<8x1xf32>
      %c6_i32_38 = arith.constant 6 : i32
      %122 = tpu.dynamic_rotate %96 by %c6_i32_38 dim 0 : vector<8x1xf32>, i32 -> vector<8x1xf32>
      %123 = arith.mulf %121, %122 : vector<8x1xf32>
      %124 = arith.addf %119, %123 : vector<8x1xf32>
      %125 = vector.extract_strided_slice %87 {offsets = [0, 1], sizes = [8, 1], strides = [1, 1]} : vector<8x5xf32> to vector<8x1xf32>
      %c7_i32 = arith.constant 7 : i32
      %126 = tpu.dynamic_rotate %125 by %c7_i32 dim 0 : vector<8x1xf32>, i32 -> vector<8x1xf32>
      %c7_i32_39 = arith.constant 7 : i32
      %127 = tpu.dynamic_rotate %96 by %c7_i32_39 dim 0 : vector<8x1xf32>, i32 -> vector<8x1xf32>
      %128 = arith.mulf %126, %127 : vector<8x1xf32>
      %129 = arith.addf %124, %128 : vector<8x1xf32>
      %cst_40 = arith.constant 0.000000e+00 : f32
      %130 = vector.broadcast %cst_40 : f32 to vector<8x1xf32>
      %131 = arith.cmpf ogt, %74, %130 : vector<8x1xf32>
      %132 = arith.extui %131 : vector<8x1xi1> to vector<8x1xi32>
      %133 = arith.sitofp %132 : vector<8x1xi32> to vector<8x1xf32>
      %cst_41 = arith.constant 1.250000e-01 : f32
      %134 = vector.broadcast %cst_41 : f32 to vector<8x1xf32>
      %135 = arith.mulf %134, %96 : vector<8x1xf32>
      %136 = arith.mulf %135, %129 : vector<8x1xf32>
      %137 = arith.mulf %136, %133 : vector<8x1xf32>
      %138 = vector.shape_cast %137 : vector<8x1xf32> to vector<1x8x1xf32>
      %cst_42 = arith.constant dense<0xFF800000> : vector<1xf32>
      %139 = vector.multi_reduction <maximumf>, %138, %cst_42 [1, 2] : vector<1x8x1xf32> to vector<1xf32>
      %140 = vector.shape_cast %139 : vector<1xf32> to vector<1x1x1xf32>
      %141 = vector.extract %140[0, 0, 0] : f32 from vector<1x1x1xf32>
      %142 = vector.broadcast %141 : f32 to vector<1x1xf32>
      %143 = vector.broadcast %142 : vector<1x1xf32> to vector<8x1xf32>
      %144 = arith.subf %137, %143 : vector<8x1xf32>
      %145 = math.exp %144 : vector<8x1xf32>
      %cst_43 = arith.constant 1.000000e-01 : f32
      %146 = vector.broadcast %cst_43 : f32 to vector<8x1xf32>
      %147 = math.powf %66, %146 : vector<8x1xf32>
      %148 = arith.mulf %147, %145 : vector<8x1xf32>
      %cst_44 = arith.constant 0.000000e+00 : f32
      %149 = vector.broadcast %cst_44 : f32 to vector<8x1xf32>
      %150 = arith.cmpf one, %74, %149 : vector<8x1xf32>
      %151 = arith.extui %150 : vector<8x1xi1> to vector<8x1xi32>
      %152 = arith.sitofp %151 : vector<8x1xi32> to vector<8x1xf32>
      %153 = arith.mulf %148, %152 : vector<8x1xf32>
      %154 = vector.shape_cast %153 : vector<8x1xf32> to vector<1x8x1xf32>
      %cst_45 = arith.constant dense<0.000000e+00> : vector<1xf32>
      %155 = vector.multi_reduction <add>, %154, %cst_45 [1, 2] : vector<1x8x1xf32> to vector<1xf32>
      %156 = vector.shape_cast %155 : vector<1xf32> to vector<1x1x1xf32>
      %157 = vector.extract %156[0, 0, 0] : f32 from vector<1x1x1xf32>
      %158 = vector.broadcast %157 : f32 to vector<1x1xf32>
      %159 = vector.broadcast %158 : vector<1x1xf32> to vector<8x1xf32>
      %160 = arith.divf %153, %159 : vector<8x1xf32>
      %cst_46 = arith.constant 0.00999999977 : f32
      %161 = vector.broadcast %cst_46 : f32 to vector<8x1xf32>
      %162 = arith.maximumf %160, %161 : vector<8x1xf32>
      %163 = tpu.iota {dimensions = array<i32: 1>} : vector<8x8xi32>
      %cst_47 = arith.constant 0.000000e+00 : f32
      %164 = vector.broadcast %cst_47 : f32 to vector<8x8xf32>
      %c0_i32_48 = arith.constant 0 : i32
      %165 = vector.broadcast %c0_i32_48 : i32 to vector<8x8xi32>
      %166 = arith.cmpi eq, %163, %165 : vector<8x8xi32>
      %167 = vector.shape_cast %86 : vector<1x1xf32> to vector<1x1xf32>
      %168 = vector.broadcast %167 : vector<1x1xf32> to vector<8x8xf32>
      %169 = arith.select %166, %168, %164 : vector<8x8xi1>, vector<8x8xf32>
      %c1_i32_49 = arith.constant 1 : i32
      %170 = vector.broadcast %c1_i32_49 : i32 to vector<8x8xi32>
      %171 = arith.cmpi eq, %163, %170 : vector<8x8xi32>
      %172 = vector.shape_cast %80 : vector<8x1xf32> to vector<8x1xf32>
      %173 = vector.broadcast %172 : vector<8x1xf32> to vector<8x8xf32>
      %174 = arith.select %171, %173, %169 : vector<8x8xi1>, vector<8x8xf32>
      %c2_i32_50 = arith.constant 2 : i32
      %175 = vector.broadcast %c2_i32_50 : i32 to vector<8x8xi32>
      %176 = arith.cmpi eq, %163, %175 : vector<8x8xi32>
      %177 = vector.shape_cast %74 : vector<8x1xf32> to vector<8x1xf32>
      %178 = vector.broadcast %177 : vector<8x1xf32> to vector<8x8xf32>
      %179 = arith.select %176, %178, %174 : vector<8x8xi1>, vector<8x8xf32>
      %c3_i32_51 = arith.constant 3 : i32
      %180 = vector.broadcast %c3_i32_51 : i32 to vector<8x8xi32>
      %181 = arith.cmpi eq, %163, %180 : vector<8x8xi32>
      %182 = vector.shape_cast %162 : vector<8x1xf32> to vector<8x1xf32>
      %183 = vector.broadcast %182 : vector<8x1xf32> to vector<8x8xf32>
      %184 = arith.select %181, %183, %179 : vector<8x8xi1>, vector<8x8xf32>
      %c0_52 = arith.constant 0 : index
      %c0_53 = arith.constant 0 : index
      %185 = vector.load %arg5[%c0_52, %c0_53] : memref<8x8xf32, #tpu.memory_space<vmem>>, vector<8x8xf32>
      tpu.vector_store %arg5[%c0_52, %c0_53], %184 {strides = array<i32>} : memref<8x8xf32, #tpu.memory_space<vmem>>, vector<8x8xf32>,
    } else {
    }
    return
  }
  func.func @transform_0(%arg0: i32) -> (i32, i32) {
    %c0_i32 = arith.constant 0 : i32
    %c0_i32_0 = arith.constant 0 : i32
    %c0_i32_1 = arith.constant 0 : i32
    return %c0_i32, %c0_i32_0 : i32, i32
  }
  func.func @transform_1(%arg0: i32) -> (i32, i32) {
    %c0_i32 = arith.constant 0 : i32
    %c0_i32_0 = arith.constant 0 : i32
    %c0_i32_1 = arith.constant 0 : i32
    return %c0_i32, %c0_i32_0 : i32, i32
  }
  func.func @transform_2(%arg0: i32) -> (i32, i32) {
    %c0_i32 = arith.constant 0 : i32
    %c0_i32_0 = arith.constant 0 : i32
    %c0_i32_1 = arith.constant 0 : i32
    return %c0_i32, %c0_i32_0 : i32, i32
  }
  func.func @transform_3(%arg0: i32) -> (i32, i32) {
    %c0_i32 = arith.constant 0 : i32
    %c0_i32_0 = arith.constant 0 : i32
    return %c0_i32, %arg0 : i32, i32
  }
  func.func @transform_4(%arg0: i32) -> (i32, i32) {
    %c0_i32 = arith.constant 0 : i32
    %c0_i32_0 = arith.constant 0 : i32
    %c0_i32_1 = arith.constant 0 : i32
    return %c0_i32, %c0_i32_0 : i32, i32
  }
}

</mosaic_0001>

<bundles_post_ra>
// kernel: tpu_custom_call.1
= control target key start
LH: loop header
LB: loop body
LE: loop exit
PB: predicated region body
PF: predicated region fallthrough
CT: control target
= control target key end

     0   :  { %9 = vsyncpa [#allocation4], 0  ;;  %s1165_s0 = inlined_call_operand.vmem [shape: f32[16,2], index: 0, kind: input, shape index: {}]   ;;  %s1166_s1 = inlined_call_operand.vmem [shape: s32[1,16], index: 1, kind: input, shape index: {}]   ;;  %s1167_s2 = inlined_call_operand.vmem [shape: f32[8,1], index: 2, kind: input, shape index: {}]   ;;  %s1168_s3 = inlined_call_operand.hbm [shape: f32[8,1152], index: 3, kind: input, shape index: {}]   ;;  %s1169_s4 = inlined_call_operand.hbm [shape: f32[8,8], index: 4, kind: output, shape index: {}]  }
   0x1   :  { %11 = vsyncpa [#allocation4 + $0x1], 0 }
   0x2   :  { %12 = vsyncpa [#allocation5], 0  ;;  %s930_s15 = smov 0   ;;  %s932_s16 = smov 0  }
   0x3   :  { %s934_s17 = smov 0   ;;  %s936_s18 = smov 0  }
   0x4 LB: > { %s949_s19 = sadd.s32 4294967295, %s887_s18   ;;  %s952_s20 = sadd.s32 1, %s887_s18   ;;  %s887_s18 = sphi %s936_s18, %s1176_s18   ;;  %s883_s17 = sphi %s934_s17, %s1175_s17   ;;  %s879_s16 = sphi %s932_s16, %s1174_s16   ;;  %s875_s15 = sphi %s930_s15, %s1173_s15  }
   0x5   : > { %s85_s21 = ssub.s32 %s887_s18, %s952_s20  ;;  %s88_s22 = sadd.s32 1, %s883_s17 }
   0x6   : > { %p86_p0 = scmp.eq.s32.totalorder %s85_s21, 0  ;;  %p95_p1 = scmp.ne.s32.totalorder %s883_s17, %s879_s16 }
   0x7   : > { %p96_p2 = scmp.eq.s32.totalorder %s887_s18, 0  ;;  %p101_p3 = scmp.ne.s32.totalorder %s879_s16, %s875_s15 }
   0x8   : > { %s962_s23 = scalar_select %p86_p0, %s883_s17, %s88_s22  }
   0x9   : > { %p97_p4 = por %p96_p2, %p95_p1  ;;  %p102_p5 = scmp.eq.s32.totalorder %s949_s19, 0 }
   0xa   : > { %p639_p7 = scmp.ge.s32.totalorder %s887_s18, 3 }
   0xb   : > { %p965_p6 = por %p102_p5, %p101_p3 }
   0xc   : > { %151 = sbr.rel (%p639_p7) target bundleno = 53 (0x35), region = 28 }
   0xd   : > { %s1171_s24 = scalar_select %p965_p6, 1, 0 }
  0x13   : > { %154 = sbr.rel (!%p97_p4) target bundleno = 53 (0x35), region = 32  ;;  %s155_s25 = sand.u32 (%p97_p4), 1, %s883_s17  }
  0x14   : > { %s641_s26 = sshll.u32 (%p97_p4), %s887_s18, 2  ;;  %s640_s27 = sshll.u32 (%p97_p4), %s155_s25, 5 }
  0x15   : > { %s161_s28 = ssub.s32 (%p97_p4), 9, %s641_s26  ;;  %s975_s5 = scalar_lea.sflag (%p97_p4), [#allocation4], %s155_s25 }
  0x16   : > { %p162_p8 = scmp.lt.s32.totalorder (%p97_p4), %s161_s28, 4  ;;  %s159_s6 = scalar_lea.vmem (%p97_p4), [#allocation3], %s640_s27 }
  0x1a   : > { %s1178_s28 = smov (!%p162_p8, %s161_s28), 4 }
  0x1b   : > { %s972_s29 = sshll.u32 %s1178_s28, 7 }
  0x1c   : > { %s166_s30 = ssub.s32 512, %s972_s29 }
  0x1d   : > { %167 = vsyncadd %s975_s5, %s166_s30  ;;  %p643_p9 = scmp.ne.s32.totalorder %s972_s29, 0  ;;  %s662_s7 = sshll.u32 %s887_s18, 9 }
  0x1e   : > { %s983_s10 = scalar_lea.hbm %s1168_s3, %s662_s7  ;;  %s173_s11 = sshll.u32 %s159_s6, 4  ;;  %s174_s11 = int_to_ptr.vmem [resolvable:$true] %s173_s11 }
  0x1f   : > { %s795_s12 = scalar_lea.hbm %s983_s10, %s972_s29  ;;  %s799_s15 = scalar_lea.hbm %s1168_s3, 1152 }
  0x20   : > { %p796_p10 = scmp.ne.s32.totalorder %s983_s10, %s795_s12  ;;  %p800_p13 = scmp.lt.u32.totalorder %s983_s10, %s1168_s3 }
  0x21   : > { %p801_p0 = scmp.lt.u32.totalorder %s799_s15, %s795_s12  ;;  %p803_p2 = scmp.lt.u32.totalorder %s795_s12, %s983_s10 }
  0x22   : > { %p797_p11 = pnand %p796_p10, %p643_p9 }
  0x23   : > { %p802_p1 = por %p801_p0, %p800_p13 }
  0x24   : > { %p798_p12 = pneg %p797_p11 }
  0x25   : > { %p804_p3 = por %p803_p2, %p802_p1 }
  0x27   : > { %p805_p4 = pnand %p804_p3, %p798_p12 }
  0x29   : > { %808 = shalt.err (!%p805_p4)
}
  0x2a   : > { %s809_s25 = scalar_lea.vmem %s174_s11, %s972_s29  ;;  %s889_s26 = smov [#allocation3]  }
  0x2b   : > { %p810_p5 = scmp.ne.s32.totalorder %s174_s11, %s809_s25  ;;  %s813_s27 = sshll.u32 %s889_s26, 4  ;;  %s814_s27 = int_to_ptr.vmem [resolvable:$false] %s813_s27 }
  0x2c   : > { %s815_s28 = scalar_lea.vmem %s814_s27, 1024  ;;  %p816_p10 = scmp.lt.s32.totalorder %s174_s11, %s814_s27 }
  0x2d   : > { %p811_p7 = pnand %p810_p5, %p643_p9  ;;  %p817_p11 = scmp.lt.s32.totalorder %s815_s28, %s809_s25 }
  0x2f   : > { %p812_p8 = pneg %p811_p7  ;;  %p818_p6 = por %p817_p11, %p816_p10 }
  0x31   : > { %p819_p0 = pnand %p818_p6, %p812_p8 }
  0x33   : > { %822 = shalt.err (!%p819_p0)
}
  0x34   : > { %176 = dma.hbm_to_vmem [thread:$0]  (%p643_p9), %s983_s10, %s972_s29, %s174_s11, %s975_s5  }
  0x35 PF: > { %p647_p12 = scmp.ge.s32.totalorder %s887_s18, 1  ;;  %p178_p13 = scmp.lt.s32.totalorder %s887_s18, 4 }
  0x37   : > { %p179_p1 = pnand %p647_p12, %p178_p13 }
  0x38   : > { %s184_s30 = sand.u32 (!%p179_p1), 1, %s879_s16   ;;  %p1172_p6 = scmp.ne.s32.totalorder (!%p179_p1), %s1171_s24, 0 }
  0x39   : > { %182 = sbr.rel (%p179_p1) target bundleno = 1321 (0x529), region = 36  ;;  %s648_s6 = sshll.u32 (!%p179_p1), %s184_s30, 5 }
  0x3a   : > { %s185_s7 = scalar_lea.sflag (!%p179_p1), [#allocation4], %s184_s30  ;;  %s188_s8 = scalar_lea.vmem (!%p179_p1), [#allocation3], %s648_s6 }
  0x40   : > { %866 = dma.done.wait (%p1172_p6), %s185_s7, 512  }
  0x41   : > { %868 = vsyncadd (%p1172_p6), %s185_s7, 4294966784  ;;  %p649_p9 = scmp.ne.s32.totalorder %s949_s19, 0 }
  0x42   : > { %vm217_vm0 = vcmask (!%p649_p9), 39936   ;;  %v890_v0 = vmov (!%p649_p9), 0.0  }
  0x43   : > { %216 = sbr.rel (%p649_p9) target bundleno = 74 (0x4a), region = 44  ;;  %218 = vst.msk [vmem:[#allocation2] sm:$0xff] (!%p649_p9), %vm217_vm0, %v890_v0 }
  0x4a PF: > { %v223_v1 = vlaneseq  ;;  %s650_s18 = sshll.u32 %s949_s19, 9  ;;  %v219_v4 = vld [vmem:[%s188_s8] sm:$0xff]  ;;  %v220_v9 = vld [vmem:[%s188_s8 + $0x8] sm:$0xff]  ;;  %v221_v10 = vld [vmem:[%s188_s8 + $0x10] sm:$0xff]  ;;  %vm315_vm10 = vcmask 39936   ;;  %p651_p2 = scmp.ne.s32.totalorder %s949_s19, 2 }
  0x4b   : > { %v229_v2 = vstv %s650_s18  ;;  %v222_v11 = vld [vmem:[%s188_s8 + $0x18] sm:$0xff]  ;;  %vm892_vm11 = vmmov (!%p651_p2), 0   ;;  %vm334_vm13 = vcmask (!%p651_p2), 130048   ;;  %s894_s12 = smov (!%p651_p2), 127   ;;  %s895_s13 = smov (!%p651_p2), 2  }
  0x4c   : > { %v1016_v3 = vand.u32 127, %v223_v1  ;;  %s896_s14 = smov (!%p651_p2), 1   ;;  %s897_s15 = smov (!%p651_p2), 3  }
  0x4d   : > { %s898_s21 = smov (!%p651_p2), 4   ;;  %s899_s22 = smov (!%p651_p2), 125  }
  0x4e   : > { %v225_v5 = vadd.s32 128, %v1016_v3  ;;  %v226_v6 = vadd.s32 256, %v1016_v3  ;;  %v227_v7 = vadd.s32 384, %v1016_v3  ;;  %v230_v8 = vadd.s32 %v229_v2, %v1016_v3  ;;  %s900_s25 = smov (!%p651_p2), 126   ;;  %s901_s26 = smov (!%p651_p2), 124  }
  0x4f   : > { %vm304_vm5 = vcmp.eq.s32.totalorder %v1016_v3, 0  ;;  %vm306_vm6 = vcmp.eq.s32.totalorder %v1016_v3, 1  ;;  %vm308_vm7 = vcmp.eq.s32.totalorder %v1016_v3, 2  ;;  %vm310_vm8 = vcmp.eq.s32.totalorder %v1016_v3, 3 }
  0x50   : > { %v231_v12 = vadd.s32 %v229_v2, %v225_v5  ;;  %v232_v13 = vadd.s32 %v229_v2, %v226_v6  ;;  %v233_v14 = vadd.s32 %v229_v2, %v227_v7  ;;  %vm234_vm1 = vcmp.lt.s32.totalorder %v230_v8, 1152 }
  0x51   : > { %v238_v15 = vsel %vm234_vm1, %v219_v4, 0.0  ;;  %vm312_vm9 = vcmp.eq.s32.totalorder %v1016_v3, 4 }
  0x52   : > { %vm235_vm2 = vcmp.lt.s32.totalorder %v231_v12, 1152  ;;  %vm236_vm3 = vcmp.lt.s32.totalorder %v232_v13, 1152  ;;  %vm237_vm4 = vcmp.lt.s32.totalorder %v233_v14, 1152  ;;  %v242_v16 = vmul.f32 %v238_v15, %v238_v15 }
  0x53   : > { %v239_v17 = vsel %vm235_vm2, %v220_v9, 0.0  ;;  %v240_v18 = vsel %vm236_vm3, %v221_v10, 0.0  ;;  %v241_v19 = vsel %vm237_vm4, %v222_v11, 0.0  ;;  %v264_v20 = vrot.slane %v238_v15, 6 }
  0x54   : > { %v243_v21 = vmul.f32 %v239_v17, %v239_v17  ;;  %v244_v22 = vmul.f32 %v240_v18, %v240_v18  ;;  %v245_v23 = vmul.f32 %v241_v19, %v241_v19  ;;  %v265_v24 = vrot.slane %v239_v17, 6 }
  0x55   : > { %v266_v25 = vrot.slane %v240_v18, 6  ;;  %v267_v26 = vrot.slane %v241_v19, 6  ;;  %v268_v27 = vmul.f32 %v264_v20, %v238_v15  ;;  %v251_v28 = vrot.slane %v238_v15, 7  ;;  %v321_v20 = vld [vmem:[%s1165_s0] sm:$0xff] (!%p651_p2) }
  0x56   : > { %v246_v29 = vadd.f32 %v243_v21, %v242_v16  ;;  %v269_v30 = vmul.f32 %v265_v24, %v239_v17  ;;  %v252_v31 = vrot.slane %v239_v17, 7  ;;  %v253_v32 = vrot.slane %v240_v18, 7  ;;  %v303_v16 = vld [vmem:[#allocation2] sm:$0xff]  ;;  %v322_v21 = vld [vmem:[%s1165_s0 + $0x8] sm:$0xff] (!%p651_p2) }
  0x57   : > { %v270_v33 = vmul.f32 %v266_v25, %v240_v18  ;;  %v271_v34 = vmul.f32 %v267_v26, %v241_v19  ;;  %v254_v35 = vrot.slane %v241_v19, 7  ;;  %v255_v36 = vmul.f32 %v251_v28, %v238_v15  ;;  %v652_v26 = vld [vmem:[%s1166_s1] ss:$0 sm:$0xff] (!%p651_p2) }
  0x58   : > { %v247_v37 = vadd.f32 %v246_v29, %v244_v22  ;;  %v272_v38 = vadd.f32 %v269_v30, %v268_v27  ;;  %v256_v39 = vmul.f32 %v252_v31, %v239_v17  ;;  %v257_v40 = vmul.f32 %v253_v32, %v240_v18 }
  0x59   : > { %v258_v41 = vmul.f32 %v254_v35, %v241_v19  ;;  %v277_v42 = vrot.slane %v238_v15, 5  ;;  %v278_v43 = vrot.slane %v239_v17, 5  ;;  %v279_v44 = vrot.slane %v240_v18, 5 }
  0x5a   : > { %v248_v45 = vadd.f32 %v247_v37, %v245_v23  ;;  %v273_v46 = vadd.f32 %v272_v38, %v270_v33  ;;  %v259_v47 = vadd.f32 %v256_v39, %v255_v36  ;;  %v280_v48 = vrot.slane %v241_v19, 5 }
  0x5b   : > { %v281_v49 = vmul.f32 %v277_v42, %v238_v15  ;;  %v282_v50 = vmul.f32 %v278_v43, %v239_v17  ;;  %v283_v51 = vmul.f32 %v279_v44, %v240_v18  ;;  %v290_v52 = vrot.slane %v238_v15, 4 }
  0x5c   : > { %249 = vadd.xlane.f32.xlu0 %v248_v45  ;;  %v274_v53 = vadd.f32 %v273_v46, %v271_v34  ;;  %v260_v54 = vadd.f32 %v259_v47, %v257_v40  ;;  %v284_v55 = vmul.f32 %v280_v48, %v241_v19  ;;  %v291_v56 = vrot.slane %v239_v17, 4 }
  0x5d   : > { %v285_v57 = vadd.f32 %v282_v50, %v281_v49  ;;  %v292_v58 = vrot.slane %v240_v18, 4  ;;  %v293_v59 = vrot.slane %v241_v19, 4  ;;  %v294_v60 = vmul.f32 %v290_v52, %v238_v15 }
  0x5e   : > { %275 = vadd.xlane.f32.xlu1 %v274_v53  ;;  %v261_v61 = vadd.f32 %v260_v54, %v258_v41  ;;  %v295_v62 = vmul.f32 %v291_v56, %v239_v17  ;;  %v326_v22 = vshrl.u32 (!%p651_p2), %v223_v1, 7  ;;  %v891_v23 = vmov (!%p651_p2), 0.0|0.0  }
  0x5f   : > { %v286_v63 = vadd.f32 %v285_v57, %v283_v51  ;;  %v296_v0 = vmul.f32 %v292_v58, %v240_v18  ;;  %v297_v2 = vmul.f32 %v293_v59, %v241_v19  ;;  %673 = vmatprep.subr.bf16.mxu0 (!%p651_p2), %v891_v23  ;;  %v674_v24 = vpack.c.bf16 (!%p651_p2), %v322_v21, %v321_v20 }
  0x60   : > { %262 = vadd.xlane.f32.xlu0 %v261_v61  ;;  %v298_v4 = vadd.f32 %v295_v62, %v294_v60  ;;  %v893_v25 = vmov (!%p651_p2), 0.0   ;;  %vm331_vm12 = vcmp.eq.s32.totalorder (!%p651_p2), %v326_v22, %v652_v26 }
  0x61   : > { %v287_v5 = vadd.f32 %v286_v63, %v284_v55  ;;  %670 = vmatprep.mubr.msk.f32.mxu0 (!%p651_p2), %vm892_vm11, %v893_v25  ;;  %675 = vmatpush3.bf16.msra.mxu0 (!%p651_p2), %v674_v24  ;;  %v653_v27 = vsel (!%p651_p2), %vm331_vm12, 1.0, %v893_v25 }
  0x62   : > { %v299_v6 = vadd.f32 %v298_v4, %v296_v0  ;;  %v1094_v4 = vld [vmem:[%s1167_s2] sm:$0xff] (!%p651_p2) }
  0x63   : > { %288 = vadd.xlane.f32.xlu1 %v287_v5  ;;  %vm702_vm12 = vcmp.lt.f32.partialorder (!%p651_p2), %v1094_v4, 0 }
  0x64   : > { %v300_v7 = vadd.f32 %v299_v6, %v297_v2  ;;  %671 = vmatmul.mubr.msk.f32.vlgmr.msra.gmra.mrb[0].mxu0 (!%p651_p2), %vm334_vm13, %v653_v27  ;;  %v902_v2 = vmov (!%p651_p2), 1   ;;  %vm703_vm13 = vcmp.eq.f32.partialorder (!%p651_p2), %v1094_v4, 0 }
  0x65   : > { %777 = vset.pattern.permute.xlu0 (!%p651_p2), %v902_v2 }
  0x66   : > { %301 = vadd.xlane.f32.xlu0 %v300_v7 }
  0xe9   : > { %v250_v8 = vpop.xlane.xlu0 %249 }
  0xea   : > { %v305_v10 = vsel %vm304_vm5, %v250_v8, 0.0 }
  0xeb   : > { %v276_v9 = vpop.xlane.xlu1 %275 }
  0xed   : > { %v263_v11 = vpop.xlane.xlu0 %262 }
  0xee   : > { %v307_v12 = vsel %vm306_vm6, %v263_v11, %v305_v10 }
  0xef   : > { %v309_v13 = vsel %vm308_vm7, %v276_v9, %v307_v12 }
  0xf0   : > { %v289_v14 = vpop.xlane.xlu1 %288 }
  0xf1   : > { %v311_v15 = vsel %vm310_vm8, %v289_v14, %v309_v13  ;;  %320 = sbr.rel (%p651_p2) target bundleno = 1296 (0x510), region = 48 }
  0xf3   : > { %v302_v17 = vpop.xlane.xlu0 %301 }
  0xf4   : > { %v313_v18 = vsel %vm312_vm9, %v302_v17, %v311_v15 }
  0xf5   : > { %v314_v19 = vadd.f32 %v313_v18, %v303_v16 }
  0xf7   : > { %316 = vst.msk [vmem:[#allocation2] sm:$0xff] %vm315_vm10, %v314_v19  ;;  %vm419_vm10 = vcmask (!%p651_p2), 7168  }
  0xfe   : > { %v1054_v31 = vld [vmem:[#allocation2] sm:$0xff] }
  0xff   : > { %779 = vrsqrt.f32 %v1054_v31  ;;  %vm433_vm15 = vcmp.eq.f32.partialorder %v1054_v31, inf  ;;  %v436_v35 = vand.u32 2147483648, %v1054_v31  ;;  %vm435_vm0 = vcmp.eq.f32.partialorder %v1054_v31, 0.0 }
 0x109   : > { %v780_v33 = vpop.eup %779 }
 0x10a   : > { %v432_v34 = vmul.f32 %v780_v33, %v1054_v31 }
 0x10c   : > { %v434_v36 = vsel %vm433_vm15, %v1054_v31, %v432_v34  ;;  %vm715_vm15 = vcmp.ne.f32.partialorder %v1094_v4, %v1094_v4 }
 0x10d   : > { %v437_v39 = vsel %vm435_vm0, %v436_v35, %v434_v36  ;;  %vm704_vm0 = vcmp.eq.f32.partialorder %v1094_v4, 1065353216 }
 0x10e   : > { %v438_v40 = vadd.f32 1e-12, %v437_v39 }
 0x137   : > { %v1048_v28 = vpop.f32.mrb[0].mxu0 }
 0x138   : > { %v672_v1 = vpop.f32.mrb[1].mxu0  ;;  %vm408_vm14 = vcmp.eq.f32.partialorder %v1048_v28, 0.0  ;;  %vm510_vm9 = vcmp.gt.f32.partialorder %v1048_v28, 0.0  ;;  %vm536_vm11 = vcmp.ne.f32.partialorder %v1048_v28, 0.0 }
 0x139   : > { %v655_v29 = vsel %vm408_vm14, 1.0, %v893_v25  ;;  %v656_v0 = vsel %vm510_vm9, 1.0, %v893_v25 }
 0x13a   : > { %v411_v30 = vadd.f32 %v655_v29, %v1048_v28 }
 0x13c   : > { %413 = vrot.lane.b32.xlu0 %v411_v30, %s894_s12 }
 0x1ae   : > { %v414_v32 = vpop.permute.xlu0 %413 }
 0x1af   : > { %781 = vrcp.f32 %v414_v32 }
 0x1b9   : > { %v782_v37 = vpop.eup %781 }
 0x1ba   : > { %v1063_v38 = vmul.f32 %v782_v37, %v1048_v28  ;;  %v657_v37 = vsel %vm536_vm11, 1.0, %v893_v25 }
 0x1bc   : > { %783 = vrsqrt.f32 %v1063_v38  ;;  %v680_v43 = vand.u32 2147483647, %v1063_v38  ;;  %vm684_vm1 = vcmp.eq.f32.partialorder %v1063_v38, inf  ;;  %v687_v44 = vand.u32 2147483648, %v1063_v38 }
 0x1bd   : > { %785 = vrcp.f32 %v438_v40  ;;  %vm678_vm2 = vcmp.eq.f32.partialorder %v1063_v38, 0.0  ;;  %vm679_vm3 = vcmp.lt.f32.partialorder %v1063_v38, 0.0  ;;  %v418_v5 = vmul.f32 %v1063_v38, %v1094_v4 }
 0x1be   : > { %vm681_vm4 = vcmp.eq.f32.partialorder %v680_v43, inf }
 0x1bf   : > { %v420_v6 = vsel %vm419_vm10, %v418_v5, 0.0 }
 0x1c6   : > { %v784_v41 = vpop.eup %783 }
 0x1c7   : > { %v683_v42 = vmul.f32 %v784_v41, %v1063_v38  ;;  %v786_v47 = vpop.eup %785 }
 0x1c9   : > { %v685_v45 = vsel %vm684_vm1, %v1063_v38, %v683_v42  ;;  %vm578_vm1 = vcmask 64512  }
 0x1ca   : > { %v688_v46 = vsel %vm678_vm2, %v687_v44, %v685_v45 }
 0x1cb   : > { %v689_v48 = vsel %vm679_vm3, nan, %v688_v46  ;;  %v903_v46 = vmov 0  }
 0x1cc   : > { %v690_v49 = vsel %vm678_vm2, 0.0, %v689_v48  ;;  %776 = vset.pattern.permute.xlu1 %v903_v46 }
 0x1cd   : > { %v691_v50 = vsel %vm681_vm4, inf, %v690_v49 }
 0x1ce   : > { %v1073_v51 = vmul.f32 %v786_v47, %v691_v50 }
 0x1d0   : > { %v455_v52 = vrot.slane %v1073_v51, 6  ;;  %v444_v53 = vrot.slane %v1073_v51, 7  ;;  %v466_v54 = vrot.slane %v1073_v51, 5  ;;  %v477_v55 = vrot.slane %v1073_v51, 4 }
 0x1d1   : > { %v443_v8 = vmul.f32 %v1073_v51, %v1054_v31  ;;  %v493_v16 = vrot.slane %v1073_v51, 3  ;;  %v500_v22 = vrot.slane %v1073_v51, 2  ;;  %v507_v27 = vrot.slane %v1073_v51, 1 }
 0x1d2   : > { %457 = vrot.lane.b32.xlu1 %v455_v52, %s895_s13  ;;  %446 = vrot.lane.b32.xlu0 %v444_v53, %s896_s14  ;;  %v513_v32 = vmul.f32 0.125, %v1073_v51 }
 0x1d6   : > { %468 = vrot.lane.b32.xlu1 %v466_v54, %s897_s15  ;;  %479 = vrot.lane.b32.xlu0 %v477_v55, %s898_s21 }
 0x1da   : > { %489 = vrot.lane.b32.xlu0 %v1054_v31, %s899_s22 }
 0x244   : > { %v458_v56 = vpop.permute.xlu1 %457  ;;  %v447_v57 = vpop.permute.xlu0 %446 }
 0x245   : > { %v460_v58 = vmul.f32 %v458_v56, %v1054_v31  ;;  %v449_v59 = vmul.f32 %v447_v57, %v1054_v31 }
 0x247   : > { %462 = vrot.lane.b32.xlu0 %v460_v58, %s900_s25  ;;  %451 = vrot.lane.b32.xlu1 %v449_v59, %s894_s12 }
 0x248   : > { %v469_v60 = vpop.permute.xlu1 %468  ;;  %v480_v62 = vpop.permute.xlu0 %479 }
 0x249   : > { %v471_v61 = vmul.f32 %v469_v60, %v1054_v31  ;;  %v482_v63 = vmul.f32 %v480_v62, %v1054_v31 }
 0x24b   : > { %496 = vrot.lane.b32.xlu0 %v1054_v31, %s900_s25  ;;  %473 = vrot.lane.b32.xlu1 %v471_v61, %s899_s22 }
 0x24c   : > { %v490_v7 = vpop.permute.xlu0 %489 }
 0x24d   : > { %v492_v14 = vrot.slane %v490_v7, 3 }
 0x24f   : > { %516 = vrot.lane.b32.xlu0 %v656_v0, %s894_s12  ;;  %484 = vrot.lane.b32.xlu1 %v482_v63, %s901_s26  ;;  %v494_v19 = vmul.f32 %v493_v16, %v492_v14 }
 0x253   : > { %503 = vrot.lane.b32.xlu1 %v1054_v31, %s894_s12 }
 0x277   : > { %421 = vadd.xlane.f32.xlu1 %v420_v6 }
 0x2b9   : > { %v452_v9 = vpop.permute.xlu1 %451  ;;  %v463_v10 = vpop.permute.xlu0 %462 }
 0x2ba   : > { %v454_v11 = vadd.f32 %v452_v9, %v443_v8 }
 0x2bc   : > { %v465_v12 = vadd.f32 %v463_v10, %v454_v11 }
 0x2bd   : > { %v474_v13 = vpop.permute.xlu1 %473  ;;  %v497_v15 = vpop.permute.xlu0 %496 }
 0x2be   : > { %v476_v17 = vadd.f32 %v474_v13, %v465_v12  ;;  %v499_v20 = vrot.slane %v497_v15, 2 }
 0x2c0   : > { %v501_v26 = vmul.f32 %v500_v22, %v499_v20 }
 0x2c1   : > { %v485_v18 = vpop.permute.xlu1 %484  ;;  %v517_v34 = vpop.permute.xlu0 %516 }
 0x2c2   : > { %v487_v21 = vadd.f32 %v485_v18, %v476_v17 }
 0x2c4   : > { %v495_v23 = vadd.f32 %v494_v19, %v487_v21 }
 0x2c5   : > { %v504_v24 = vpop.permute.xlu1 %503 }
 0x2c6   : > { %v506_v1 = vrot.slane %v504_v24, 1  ;;  %v502_v29 = vadd.f32 %v501_v26, %v495_v23 }
 0x2c8   : > { %v508_v30 = vmul.f32 %v507_v27, %v506_v1 }
 0x2ca   : > { %v509_v31 = vadd.f32 %v508_v30, %v502_v29 }
 0x2cc   : > { %v514_v33 = vmul.f32 %v513_v32, %v509_v31 }
 0x2ce   : > { %v519_v35 = vmul.f32 %v517_v34, %v514_v33 }
 0x2d0   : > { %v520_v36 = vsel %vm419_vm10, %v519_v35, -inf }
 0x2d1   : > { %521 = vmax.xlane.f32.xlu0 %v520_v36 }
 0x2e7   : > { %540 = vrot.lane.b32.xlu0 %v657_v37, %s894_s12 }
 0x2eb   : > { %568 = vperm.xlu0 %777, %v1048_v28   ;;  %v698_v28 = vand.u32 2147483647, %v1094_v4 }
 0x2ed   : > { %787 = vlog2.f32 %v698_v28  ;;  %vm707_vm14 = vcmp.eq.f32.partialorder %v698_v28, 2139095040 }
 0x2ef   : > { %778 = vset.pattern.permute.xlu0 %v903_v46 }
 0x2f7   : > { %v788_v53 = vpop.eup %787 }
 0x2f8   : > { %v700_v54 = vmul.f32 0.1, %v788_v53 }
 0x2fa   : > { %789 = vpow2.f32 %v700_v54 }
 0x304   : > { %v422_v39 = vpop.xlane.xlu1 %421  ;;  %v790_v55 = vpop.eup %789 }
 0x305   : > { %v423_v40 = vrot.slane %v422_v39, 4  ;;  %v708_v58 = vsel %vm702_vm12, 2143289344, %v790_v55 }
 0x306   : > { %v709_v60 = vsel %vm703_vm13, 0, %v708_v58 }
 0x307   : > { %v424_v41 = vadd.f32 %v423_v40, %v422_v39  ;;  %v714_v61 = vsel %vm707_vm14, 2139095040, %v709_v60 }
 0x308   : > { %v718_v62 = vsel %vm715_vm15, 2143289344, %v714_v61 }
 0x309   : > { %v425_v42 = vrot.slane %v424_v41, 2  ;;  %v719_v63 = vsel %vm704_vm0, 1065353216, %v718_v62 }
 0x30b   : > { %v426_v43 = vadd.f32 %v425_v42, %v424_v41 }
 0x30d   : > { %v427_v44 = vrot.slane %v426_v43, 1 }
 0x30f   : > { %v428_v45 = vadd.f32 %v427_v44, %v426_v43 }
 0x311   : > { %676 = vpush %v428_v45 }
 0x342   : > { %s1111_s30 = spop %676 }
 0x343   : > { %v558_v18 = vstv %s1111_s30 }
 0x35e   : > { %v522_v47 = vpop.xlane.xlu0 %521 }
 0x35f   : > { %v523_v48 = vrot.slane %v522_v47, 4 }
 0x361   : > { %v524_v49 = vmax.f32 %v522_v47, %v523_v48 }
 0x362   : > { %v541_v5 = vpop.permute.xlu0 %540 }
 0x363   : > { %v525_v50 = vrot.slane %v524_v49, 2 }
 0x365   : > { %v526_v25 = vmax.f32 %v524_v49, %v525_v50 }
 0x367   : > { %v527_v51 = vrot.slane %v526_v25, 1 }
 0x369   : > { %v528_v52 = vmax.f32 %v526_v25, %v527_v51 }
 0x36a   : > { %v569_v21 = vpop.permute.xlu0 %568 }
 0x36b   : > { %692 = vpush %v528_v52 }
 0x39c   : > { %s693_s6 = spop %692 }
 0x39d   : > { %v530_v56 = vstv %s693_s6 }
 0x39e   : > { %v531_v57 = vsub.f32 %v519_v35, %v530_v56 }
 0x3a0   : > { %v532_v59 = vmul.f32 1.442695, %v531_v57 }
 0x3a2   : > { %791 = vpow2.f32 %v532_v59 }
 0x3ac   : > { %v792_v0 = vpop.eup %791 }
 0x3ad   : > { %v535_v2 = vmul.f32 %v792_v0, %v719_v63 }
 0x3af   : > { %v543_v6 = vmul.f32 %v541_v5, %v535_v2 }
 0x3b1   : > { %v544_v7 = vsel %vm419_vm10, %v543_v6, 0.0 }
 0x3b2   : > { %545 = vadd.xlane.f32.xlu1 %v544_v7 }
 0x3c3   : > { %562 = vperm.xlu1 %776, %v1063_v38   ;;  %v559_v38 = vsel %vm304_vm5, %v558_v18, 0.0 }
 0x43f   : > { %v546_v8 = vpop.xlane.xlu1 %545 }
 0x440   : > { %v547_v9 = vrot.slane %v546_v8, 4 }
 0x442   : > { %v548_v10 = vadd.f32 %v547_v9, %v546_v8 }
 0x443   : > { %v563_v19 = vpop.permute.xlu1 %562 }
 0x444   : > { %v549_v11 = vrot.slane %v548_v10, 2  ;;  %v565_v20 = vsel %vm306_vm6, %v563_v19, %v559_v38 }
 0x445   : > { %v571_v22 = vsel %vm308_vm7, %v569_v21, %v565_v20 }
 0x446   : > { %v550_v12 = vadd.f32 %v549_v11, %v548_v10 }
 0x448   : > { %v551_v13 = vrot.slane %v550_v12, 1 }
 0x44a   : > { %v552_v14 = vadd.f32 %v551_v13, %v550_v12 }
 0x44c   : > { %720 = vpush %v552_v14 }
 0x47d   : > { %s721_s7 = spop %720 }
 0x47e   : > { %v554_v4 = vstv %s721_s7 }
 0x47f   : > { %793 = vrcp.f32 %v554_v4 }
 0x489   : > { %v794_v15 = vpop.eup %793 }
 0x48a   : > { %v556_v16 = vmul.f32 %v794_v15, %v543_v6 }
 0x48c   : > { %v557_v17 = vmax.f32 %v556_v16, 0.01 }
 0x48e   : > { %574 = vperm.xlu1 %776, %v557_v17  }
 0x50d   : > { %v575_v23 = vpop.permute.xlu1 %574 }
 0x50e   : > { %v577_v24 = vsel %vm310_vm8, %v575_v23, %v571_v22 }
 0x50f   : > { %579 = vst.msk [vmem:[#allocation6] sm:$0xff] %vm578_vm1, %v577_v24 }
 0x510 PF: > { %p727_p3 = scmp.eq.s32.totalorder %s949_s19, 2  ;;  %s904_s8 = smov [#allocation6]  }
 0x511   : > { %s587_s18 = sshll.u32 %s904_s8, 4  ;;  %s588_s18 = int_to_ptr.vmem [resolvable:$true] %s587_s18 }
 0x512   : > { %s823_s24 = scalar_lea.vmem %s588_s18, 128  ;;  %p830_p8 = scmp.lt.s32.totalorder %s588_s18, %s588_s18 }
 0x513   : > { %p824_p4 = scmp.ne.s32.totalorder %s588_s18, %s823_s24  ;;  %p831_p10 = scmp.lt.s32.totalorder %s823_s24, %s823_s24 }
 0x515   : > { %p825_p5 = pnand %p824_p4, %p727_p3  ;;  %p832_p11 = por %p831_p10, %p830_p8 }
 0x517   : > { %p826_p7 = pneg %p825_p5 }
 0x519   : > { %p833_p0 = pnand %p832_p11, %p826_p7 }
 0x51b   : > { %836 = shalt.err (!%p833_p0)
}
 0x51c   : > { %s837_s9 = scalar_lea.hbm %s1169_s4, 128 }
 0x51d   : > { %p838_p12 = scmp.ne.s32.totalorder %s1169_s4, %s837_s9  ;;  %p843_p6 = scmp.lt.u32.totalorder %s837_s9, %s1169_s4 }
 0x51f   : > { %p839_p13 = pnand %p838_p12, %p727_p3 }
 0x521   : > { %p840_p1 = pneg %p839_p13 }
 0x523   : > { %p845_p9 = pnand %p843_p6, %p840_p1 }
 0x525   : > { %848 = shalt.err (!%p845_p9)
}
 0x526   : > { %724 = dma.vmem_to_hbm [thread:$0]  (%p727_p3), %s588_s18, 128, %s1169_s4, [#allocation5]  }
 0x527   : > { %870 = dma.done.wait (%p727_p3), [#allocation5], 128  }
 0x528   : > { %872 = vsyncadd (%p727_p3), [#allocation5], 4294967168 }
 0x529 PF: > { %p15_p2 = scmp.ge.s32.totalorder %s952_s20, 5   ;;  %s1173_s15 = smov %s879_s16 }
 0x52a   : > { %s1174_s16 = smov %s883_s17  ;;  %s1175_s17 = smov %s962_s23 }
 0x52b   : > { %s1176_s18 = smov %s952_s20  ;;  %17 = sbr.rel (!%p15_p2) target bundleno = 4 (0x4), region = 81 }
 0x532   :  { %600 = vsyncpa [#allocation4], 1 }
 0x533   :  { %602 = vsyncpa [#allocation4 + $0x1], 1 }
 0x534   :  { %603 = vsyncpa [#allocation5], 1 }
 0x535   :  { %605 = vsyncpa [#allocation5 + $0x1], 1 }

</bundles_post_ra>
